<compile_context>
chip_gen: v7x
topology: tpu7x:2x2x1
jax: 0.10.0
libtpu: 0.0.40
codegen_flags: <defaults>
</compile_context>

<pallas_src>
import jax
import jax.numpy as jnp
from jax.experimental import pallas as pl
from jax.experimental.pallas import tpu as pltpu

_LANE = 128


def _round_up(a, b):
    return (a + b - 1) // b * b


def _splitted_mlp_kernel(x_ref, w_ref, b_ref, h_ref, m_ref):
    # x_ref: (TM, K) ; w_ref: (K, 2*Hp) ; b_ref: (1, Hp) f32
    # h_ref / m_ref: (TM, Hp)
    slab = jnp.dot(x_ref[...], w_ref[...],
                   preferred_element_type=jnp.float32)         # (TM, 2*Hp)
    Hp = h_ref.shape[-1]
    # Split at a 128-aligned boundary (free); bias only on the h half.
    h_ref[...] = (slab[:, :Hp] + b_ref[...]).astype(h_ref.dtype)
    m_ref[...] = slab[:, Hp:].astype(m_ref.dtype)


def prepare_splitted_mlp_params(w_h, b_h, w_m):
    """One-time parameter prep (do NOT call per step).

    w_h, w_m: torch layout (mlp_hidden_dim, lstm_dim); b_h: (mlp_hidden_dim,).
    Returns:
      w_fused: (lstm_dim, 2*H_pad)  -- [W_h^T | W_m^T], each half zero-padded
               along the output dim to a multiple of 128 (lane-dense stores).
      b_fused: (1, H_pad) float32   -- bias for the h half only (fc_m has none).
    """
    H, _K = w_h.shape
    Hp = _round_up(H, _LANE)
    pad = Hp - H
    wh_t = jnp.pad(w_h.T, ((0, 0), (0, pad)))                  # (K, Hp)
    wm_t = jnp.pad(w_m.T, ((0, 0), (0, pad)))                  # (K, Hp)
    w_fused = jnp.concatenate([wh_t, wm_t], axis=1)            # (K, 2*Hp)
    b_fused = jnp.pad(b_h, (0, pad)).astype(jnp.float32).reshape(1, Hp)
    return w_fused, b_fused


def splitted_mlp(lstm_out, w_fused, b_fused, mlp_hidden_dim):
    """lstm_out: (B, S, lstm_dim); w_fused: (lstm_dim, 2*Hp); b_fused: (1, Hp).
    Returns (heads_hidden, mods_hidden), each (B, S, mlp_hidden_dim)."""
    B, S, K = lstm_out.shape
    N2 = w_fused.shape[1]
    Hp = N2 // 2
    H = mlp_hidden_dim
    M = B * S
    dtype = lstm_out.dtype
    itemsize = jnp.dtype(dtype).itemsize

    x2d = lstm_out.reshape(M, K)

    # --- VMEM budget derived from the actual chip (v5e/v6e: 128 MiB, v7x: 64) ---
    try:
        vmem_cap = int(pltpu.get_tpu_info().vmem_capacity_bytes)
    except Exception:
        vmem_cap = 64 * 1024 * 1024                            # v7x-safe fallback
    VMEM_BUDGET = int(vmem_cap * 3 // 4)

    def vmem_estimate(tm):
        return (2 * tm * K * itemsize          # x tile, double-buffered
                + K * N2 * itemsize            # fused weight, single-buffered
                + Hp * 4                       # bias (f32)
                + 2 * 2 * tm * Hp * itemsize   # two outputs, double-buffered
                + tm * N2 * 4)                 # f32 matmul slab

    TM = 2048
    while TM > 8 and vmem_estimate(TM) > VMEM_BUDGET:
        TM //= 2
    # Guarantee >= 2 M tiles so v7x's two TensorCores both get work
    # (harmless on single-TC v5e/v6e).
    TM = max(8, min(TM, _round_up(pl.cdiv(M, 2), 8)))

    grid = (pl.cdiv(M, TM),)                   # ragged last tile masked by Pallas

    out_shape = (
        jax.ShapeDtypeStruct((M, Hp), dtype),
        jax.ShapeDtypeStruct((M, Hp), dtype),
    )

    cost = pl.CostEstimate(
        flops=2 * M * K * N2,
        transcendentals=0,
        bytes_accessed=(M * K + K * N2 + Hp + 2 * M * Hp) * itemsize,
    )

    h2d, m2d = pl.pallas_call(
        _splitted_mlp_kernel,
        out_shape=out_shape,
        grid=grid,
        in_specs=[
            pl.BlockSpec((TM, K), lambda i: (i, 0)),                  # x, streamed over M
            pl.BlockSpec((K, N2), lambda i: (0, 0),
                         pipeline_mode=pl.Buffered(1)),               # weight, resident
            pl.BlockSpec((1, Hp), lambda i: (0, 0),
                         pipeline_mode=pl.Buffered(1)),               # bias, resident
        ],
        out_specs=[
            pl.BlockSpec((TM, Hp), lambda i: (i, 0)),
            pl.BlockSpec((TM, Hp), lambda i: (i, 0)),
        ],
        compiler_params=pltpu.CompilerParams(
            dimension_semantics=("parallel",),
            vmem_limit_bytes=VMEM_BUDGET,
        ),
        cost_estimate=cost,
    )(x2d, w_fused, b_fused)

    if Hp != H:
        h2d = h2d[:, :H]
        m2d = m2d[:, :H]
    return h2d.reshape(B, S, H), m2d.reshape(B, S, H)


if __name__ == "__main__":
    # Small shapes consistent with the module: LSTM output (batch, seq, lstm_dim).
    B, S = 2, 8
    lstm_dim = 32
    mlp_hidden_dim = 32

    key = jax.random.PRNGKey(0)
    k_x, k_wh, k_bh, k_wm = jax.random.split(key, 4)

    lstm_out = jax.random.normal(k_x, (B, S, lstm_dim), dtype=jnp.float32)
    # Torch Linear shapes: weight (out, in), bias (out,)
    bound = 1.0 / jnp.sqrt(lstm_dim)
    w_h = jax.random.uniform(k_wh, (mlp_hidden_dim, lstm_dim),
                             minval=-bound, maxval=bound, dtype=jnp.float32)
    b_h = jax.random.uniform(k_bh, (mlp_hidden_dim,),
                             minval=-bound, maxval=bound, dtype=jnp.float32)
    w_m = jax.random.uniform(k_wm, (mlp_hidden_dim, lstm_dim),
                             minval=-bound, maxval=bound, dtype=jnp.float32)

    # One-time param prep (transpose + fuse + lane-pad), then the hot-path call.
    w_fused, b_fused = prepare_splitted_mlp_params(w_h, b_h, w_m)
    heads_hidden, mods_hidden = splitted_mlp(lstm_out, w_fused, b_fused,
                                             mlp_hidden_dim)
    heads_hidden = jax.block_until_ready(heads_hidden)
    mods_hidden = jax.block_until_ready(mods_hidden)

    # Reference check against plain JAX (same semantics as torch Linear).
    ref_h = jnp.einsum("bsk,hk->bsh", lstm_out, w_h) + b_h
    ref_m = jnp.einsum("bsk,hk->bsh", lstm_out, w_m)
    assert jnp.allclose(heads_hidden, ref_h, atol=1e-5, rtol=1e-5)
    assert jnp.allclose(mods_hidden, ref_m, atol=1e-5, rtol=1e-5)

    # TODO(synk): optional bf16 x/weight path (keep f32 accumulation) would ~2x
    # HBM-bound throughput if model accuracy permits.
    print("KERNEL_OK")
</pallas_src>

<mosaic_0001>
module attributes {stable_mosaic.version = 11 : i64} {
  func.func @_splitted_mlp_kernel(%arg0: i32, %arg1: memref<8x32xf32, #tpu.memory_space<vmem>>, %arg2: memref<32x256xf32, #tpu.memory_space<vmem>>, %arg3: memref<1x128xf32, #tpu.memory_space<vmem>>, %arg4: memref<8x128xf32, #tpu.memory_space<vmem>>, %arg5: memref<8x128xf32, #tpu.memory_space<vmem>>) attributes {dimension_semantics = [#tpu.dimension_semantics<parallel>], iteration_bounds = array<i64: 2>, scalar_prefetch = 0 : i64, scratch_operands = 0 : i64, tpu.core_type = #tpu.core_type<tc>, window_params = [{transform_indices = @transform_0, window_bounds = array<i64: 8, 32>}, {pipeline_mode = #tpu.pipeline_mode<synchronous>, transform_indices = @transform_1, window_bounds = array<i64: 32, 256>}, {pipeline_mode = #tpu.pipeline_mode<synchronous>, transform_indices = @transform_2, window_bounds = array<i64: 1, 128>}, {transform_indices = @transform_3, window_bounds = array<i64: 8, 128>}, {transform_indices = @transform_4, window_bounds = array<i64: 8, 128>}]} {
    %c0 = arith.constant 0 : index
    %c0_0 = arith.constant 0 : index
    %0 = vector.load %arg1[%c0, %c0_0] : memref<8x32xf32, #tpu.memory_space<vmem>>, vector<8x32xf32>
    %c0_1 = arith.constant 0 : index
    %c0_2 = arith.constant 0 : index
    %1 = vector.load %arg2[%c0_1, %c0_2] : memref<32x256xf32, #tpu.memory_space<vmem>>, vector<32x256xf32>
    %cst = arith.constant dense<0.000000e+00> : vector<8x256xf32>
    %2 = tpu.matmul %0, %1, %cst {dimension_numbers = #tpu.dot_dimension_numbers<[1], [0], [0], [1], [0, 0, 1, 1], [], []>} : vector<8x32xf32>, vector<32x256xf32>, vector<8x256xf32> -> vector<8x256xf32>
    %3 = vector.extract_strided_slice %2 {offsets = [0, 0], sizes = [8, 128], strides = [1, 1]} : vector<8x256xf32> to vector<8x128xf32>
    %c0_3 = arith.constant 0 : index
    %c0_4 = arith.constant 0 : index
    %4 = vector.load %arg3[%c0_3, %c0_4] : memref<1x128xf32, #tpu.memory_space<vmem>>, vector<1x128xf32>
    %5 = vector.broadcast %4 : vector<1x128xf32> to vector<8x128xf32>
    %6 = arith.addf %3, %5 : vector<8x128xf32>
    %c0_5 = arith.constant 0 : index
    %c0_6 = arith.constant 0 : index
    %7 = vector.load %arg4[%c0_5, %c0_6] : memref<8x128xf32, #tpu.memory_space<vmem>>, vector<8x128xf32>
    tpu.vector_store %arg4[%c0_5, %c0_6], %6 {strides = array<i32>} : memref<8x128xf32, #tpu.memory_space<vmem>>, vector<8x128xf32>,
    %8 = vector.extract_strided_slice %2 {offsets = [0, 128], sizes = [8, 128], strides = [1, 1]} : vector<8x256xf32> to vector<8x128xf32>
    %c0_7 = arith.constant 0 : index
    %c0_8 = arith.constant 0 : index
    %9 = vector.load %arg5[%c0_7, %c0_8] : memref<8x128xf32, #tpu.memory_space<vmem>>, vector<8x128xf32>
    tpu.vector_store %arg5[%c0_7, %c0_8], %8 {strides = array<i32>} : memref<8x128xf32, #tpu.memory_space<vmem>>, vector<8x128xf32>,
    return
  }
  func.func @transform_0(%arg0: i32) -> (i32, i32) {
    %c0_i32 = arith.constant 0 : i32
    %c0_i32_0 = arith.constant 0 : i32
    return %arg0, %c0_i32 : i32, i32
  }
  func.func @transform_1(%arg0: i32) -> (i32, i32) {
    %c0_i32 = arith.constant 0 : i32
    %c0_i32_0 = arith.constant 0 : i32
    %c0_i32_1 = arith.constant 0 : i32
    return %c0_i32, %c0_i32_0 : i32, i32
  }
  func.func @transform_2(%arg0: i32) -> (i32, i32) {
    %c0_i32 = arith.constant 0 : i32
    %c0_i32_0 = arith.constant 0 : i32
    %c0_i32_1 = arith.constant 0 : i32
    return %c0_i32, %c0_i32_0 : i32, i32
  }
  func.func @transform_3(%arg0: i32) -> (i32, i32) {
    %c0_i32 = arith.constant 0 : i32
    %c0_i32_0 = arith.constant 0 : i32
    return %arg0, %c0_i32 : i32, i32
  }
  func.func @transform_4(%arg0: i32) -> (i32, i32) {
    %c0_i32 = arith.constant 0 : i32
    %c0_i32_0 = arith.constant 0 : i32
    return %arg0, %c0_i32 : i32, i32
  }
}

</mosaic_0001>

<bundles_post_ra>
// kernel: tpu_custom_call.1
= control target key start
LH: loop header
LB: loop body
LE: loop exit
PB: predicated region body
PF: predicated region fallthrough
CT: control target
= control target key end

     0   :  { %10 = vsyncpa [#allocation3], 0  ;;  %s996_s0 = inlined_call_operand.hbm [shape: f32[16,32], index: 0, kind: input, shape index: {}]   ;;  %s997_s1 = inlined_call_operand.hbm [shape: f32[32,256], index: 1, kind: input, shape index: {}]   ;;  %s998_s2 = inlined_call_operand.vmem [shape: f32[1,128], index: 2, kind: input, shape index: {}]   ;;  %s999_s3 = inlined_call_operand.hbm [shape: f32[16,128], index: 3, kind: output, shape index: {0}]   ;;  %s1000_s4 = inlined_call_operand.hbm [shape: f32[16,128], index: 4, kind: output, shape index: {1}]  }
   0x1   :  { %12 = vsyncpa [#allocation3 + $0x1], 0 }
   0x2   :  { %13 = vsyncpa [#allocation6], 0 }
   0x3   :  { %14 = vsyncpa [#allocation4], 0 }
   0x4   :  { %16 = vsyncpa [#allocation4 + $0x1], 0 }
   0x5   :  { %17 = vsyncpa [#allocation9], 0 }
   0x6   :  { %19 = vsyncpa [#allocation9 + $0x1], 0  ;;  %s763_s15 = smov 0   ;;  %s765_s16 = smov 0  }
   0x7   :  { %s767_s17 = smov 0   ;;  %s769_s18 = smov 0  }
   0x8 LB: > { %s784_s19 = sadd.s32 4294967295, %s729_s18   ;;  %s477_s20 = sadd.s32 4294967294, %s729_s18   ;;  %s729_s18 = sphi %s769_s18, %s1020_s18   ;;  %s725_s17 = sphi %s767_s17, %s1019_s17   ;;  %s721_s16 = sphi %s765_s16, %s1018_s16   ;;  %s717_s15 = sphi %s763_s15, %s1017_s15  }
   0x9   : > { %p45_p0 = scmp.ne.s32.totalorder %s721_s16, %s717_s15  ;;  %p1001_p1 = scmp.eq.s32.totalorder %s784_s19, 0 }
   0xa   : > { %p117_p3 = scmp.eq.s32.totalorder %s477_s20, 1  ;;  %p478_p5 = scmp.ge.s32.totalorder %s729_s18, 1 }
   0xb   : > { %p793_p4 = por %p1001_p1, %p45_p0  ;;  %p150_p7 = scmp.lt.s32.totalorder %s729_s18, 3 }
   0xc   : > { %p798_p6 = por %p117_p3, %p45_p0  ;;  %s731_s24 = smov [#allocation5]  }
   0xd   : > { %s1004_s21 = scalar_select %p793_p4, 1, 0 }
   0xe   : > { %s1005_s22 = scalar_select %p798_p6, 1, 0 }
   0xf   : > { %p803_p8 = pnand %p478_p5, %p150_p7  ;;  %s162_s25 = sshll.u32 %s731_s24, 4  ;;  %s807_s25 = int_to_ptr.vmem [resolvable:$true] %s162_s25 }
  0x10   : > { %s819_s27 = sadd.s32 1, %s729_s18   ;;  %s32_s28 = sadd.s32 1, %s725_s17 }
  0x11   : > { %s1006_s23 = scalar_select %p803_p8, 1, 0 }
  0x12   : > { %p514_p9 = pneg %p803_p8  ;;  %s29_s29 = ssub.s32 %s729_s18, %s819_s27 }
  0x13   : > { %s569_s6 = scalar_lea.hbm %s997_s1, 1024 }
  0x14   : > { %p814_p11 = pnand %p514_p9, %p1001_p1  ;;  %p570_p12 = scmp.ne.s32.totalorder %s997_s1, %s569_s6 }
  0x15   : > { %p576_p5 = scmp.lt.u32.totalorder %s569_s6, %s997_s1 }
  0x16   : > { %p571_p13 = pneg %p814_p11 }
  0x18   : > { %p572_p0 = pnand %p571_p13, %p570_p12 }
  0x1a   : > { %p573_p3 = pneg %p572_p0 }
  0x1c   : > { %p578_p7 = pnand %p576_p5, %p573_p3 }
  0x1e   : > { %581 = shalt.err (!%p578_p7)
}
  0x1f   : > { %s582_s11 = scalar_lea.vmem %s807_s25, 1024  ;;  %p590_p2 = scmp.lt.s32.totalorder %s807_s25, %s807_s25 }
  0x20   : > { %p583_p9 = scmp.ne.s32.totalorder %s807_s25, %s582_s11  ;;  %p591_p6 = scmp.lt.s32.totalorder %s582_s11, %s582_s11 }
  0x22   : > { %p585_p10 = pnand %p583_p9, %p571_p13  ;;  %p592_p4 = por %p591_p6, %p590_p2 }
  0x24   : > { %p586_p1 = pneg %p585_p10 }
  0x26   : > { %p593_p8 = pnand %p592_p4, %p586_p1 }
  0x28   : > { %596 = shalt.err (!%p593_p8)
}
  0x29   : > { %s732_s12 = smov 256   ;;  %s733_s13 = smov 16  }
  0x2a   : > { %517 = dma.hbm_to_vmem [thread:$0]  (!%p814_p11), %s997_s1, 1024, %s807_s25, [#allocation6], %s732_s12, %s732_s12, %s733_s13  }
  0x2b   : > { %p30_p2 = scmp.eq.s32.totalorder %s29_s29, 0  ;;  %p39_p1 = scmp.ne.s32.totalorder %s725_s17, %s721_s16 }
  0x2c   : > { %p40_p4 = scmp.eq.s32.totalorder %s729_s18, 0  ;;  %p530_p6 = scmp.lt.s32.totalorder %s729_s18, 2 }
  0x2d   : > { %s850_s24 = scalar_select %p30_p2, %s725_s17, %s32_s28  }
  0x2e   : > { %p41_p8 = por %p40_p4, %p39_p1  ;;  %p1008_p10 = scmp.eq.s32.totalorder %s784_s19, 1 }
  0x2f   : > { %s179_s5 = sand.u32 1, %s725_s17   ;;  %s482_s6 = sshll.u32 %s729_s18, 7 }
  0x30   : > { %p854_p12 = por %p1008_p10, %p39_p1  ;;  %s481_s7 = sshll.u32 %s179_s5, 3 }
  0x31   : > { %s863_s9 = scalar_lea.hbm %s996_s0, %s482_s6  ;;  %s183_s25 = scalar_lea.vmem [#allocation2], %s481_s7 }
  0x32   : > { %s190_s28 = sshll.u32 %s183_s25, 4  ;;  %p865_p11 = pnand %p530_p6, %p41_p8  ;;  %s869_s28 = int_to_ptr.vmem [resolvable:$true] %s190_s28 }
  0x33   : > { %s180_s10 = scalar_lea.sflag [#allocation3], %s179_s5  ;;  %s597_s11 = scalar_lea.hbm %s863_s9, 128 }
  0x34   : > { %p598_p13 = scmp.ne.s32.totalorder %s863_s9, %s597_s11  ;;  %p599_p0 = pneg %p865_p11 }
  0x35   : > { %s602_s14 = scalar_lea.hbm %s996_s0, 256  ;;  %p603_p7 = scmp.lt.u32.totalorder %s863_s9, %s996_s0 }
  0x36   : > { %p600_p3 = pnand %p599_p0, %p598_p13  ;;  %p604_p9 = scmp.lt.u32.totalorder %s602_s14, %s597_s11 }
  0x37   : > { %p606_p1 = scmp.lt.u32.totalorder %s597_s11, %s863_s9 }
  0x38   : > { %p601_p5 = pneg %p600_p3  ;;  %p605_p2 = por %p604_p9, %p603_p7 }
  0x3a   : > { %p607_p4 = por %p606_p1, %p605_p2 }
  0x3c   : > { %p608_p6 = pnand %p607_p4, %p601_p5 }
  0x3e   : > { %611 = shalt.err (!%p608_p6)
}
  0x3f   : > { %s612_s5 = scalar_lea.vmem %s869_s28, 128  ;;  %s734_s7 = smov [#allocation2]  }
  0x40   : > { %p613_p8 = scmp.ne.s32.totalorder %s869_s28, %s612_s5  ;;  %s617_s26 = sshll.u32 %s734_s7, 4  ;;  %s618_s26 = int_to_ptr.vmem [resolvable:$false] %s617_s26 }
  0x41   : > { %s619_s8 = scalar_lea.vmem %s618_s26, 256  ;;  %p620_p3 = scmp.lt.s32.totalorder %s869_s28, %s618_s26 }
  0x42   : > { %p615_p10 = pnand %p613_p8, %p599_p0  ;;  %p621_p7 = scmp.lt.s32.totalorder %s619_s8, %s612_s5 }
  0x44   : > { %p616_p13 = pneg %p615_p10  ;;  %p622_p9 = por %p621_p7, %p620_p3 }
  0x46   : > { %p623_p2 = pnand %p622_p9, %p616_p13 }
  0x48   : > { %626 = shalt.err (!%p623_p2)
}
  0x49   : > { %521 = dma.hbm_to_vmem [thread:$0]  (!%p865_p11), %s863_s9, 128, %s869_s28, %s180_s10  }
  0x4a   : > { %p1011_p5 = scmp.ne.s32.totalorder %s1006_s23, 0 }
  0x4b   : > { %s899_s25 = sand.u32 (!%p1011_p5), 1, %s721_s16   ;;  %p1012_p0 = scmp.ne.s32.totalorder (!%p1011_p5), %s1004_s21, 0 }
  0x4c   : > { %199 = sbr.rel (%p1011_p5) target bundleno = 349 (0x15d), region = 32  ;;  %s902_s11 = sshll.u32 (!%p1011_p5), %s899_s25, 3 }
  0x4d   : > { %s202_s12 = scalar_lea.sflag (!%p1011_p5), [#allocation3], %s899_s25  ;;  %s205_s13 = scalar_lea.vmem (!%p1011_p5), [#allocation2], %s902_s11 }
  0x53   : > { %700 = dma.done.wait (%p1012_p0), %s202_s12, 128  }
  0x54   : > { %702 = vsyncadd (%p1012_p0), %s202_s12, 4294967168  ;;  %p1013_p11 = scmp.eq.s32.totalorder %s784_s19, 0 }
  0x56   : > { %704 = dma.done.wait (%p1013_p11), [#allocation6], 1024   ;;  %p1014_p1 = pmov %p1013_p11 }
  0x57   : > { %v735_v0 = vmov 0.0   ;;  %v241_v1 = vld [vmem:[#allocation5 + $0x8] sm:$0xff]  ;;  %v243_v2 = vld [vmem:[#allocation5 + $0x18] sm:$0xff]  ;;  %v240_v3 = vld [vmem:[#allocation5] sm:$0xff]  ;;  %vm248_vm0 = vcmask 261120   ;;  %s238_s21 = scalar_lea.vmem [#allocation8], %s902_s11 }
  0x58   : > { %706 = vsyncadd (%p1014_p1), [#allocation6], 4294966272  ;;  %316 = vmatprep.mubr.f32.mxu0 %v735_v0  ;;  %v496_v4 = vpack.c.bf16 %v243_v2, %v241_v1  ;;  %v242_v5 = vld [vmem:[#allocation5 + $0x10] sm:$0xff]  ;;  %v245_v6 = vld [vmem:[#allocation5 + $0x28] sm:$0xff]  ;;  %s365_s23 = sshll.u32 %s238_s21, 4  ;;  %s492_s9 = sshll.u32 %s784_s19, 7  ;;  %s920_s23 = int_to_ptr.vmem [resolvable:$true] %s365_s23 }
  0x59   : > { %v247_v7 = vld [vmem:[#allocation5 + $0x38] sm:$0xff]  ;;  %v498_v8 = vpack.c.bf16 %v242_v5, %v240_v3  ;;  %v244_v10 = vld [vmem:[#allocation5 + $0x20] sm:$0xff]  ;;  %v246_v11 = vld [vmem:[#allocation5 + $0x30] sm:$0xff]  ;;  %s231_s10 = scalar_lea.vmem [#allocation7], %s902_s11  ;;  %s925_s5 = scalar_lea.hbm %s1000_s4, %s492_s9 }
  0x5a   : > { %v500_v9 = vpack.c.bf16 %v247_v7, %v245_v6  ;;  %497 = vmatprep.subr.bf16.mxu0 %v496_v4  ;;  %v502_v12 = vpack.c.bf16 %v246_v11, %v244_v10  ;;  %v239_v13 = vld [vmem:[%s205_s13] sm:$0xff]  ;;  %s352_s14 = sshll.u32 %s231_s10, 4  ;;  %s930_s26 = scalar_lea.hbm %s999_s3, %s492_s9  ;;  %s932_s14 = int_to_ptr.vmem [resolvable:$true] %s352_s14 }
  0x5b   : > { %499 = vmatpush1.bf16.msra.mxu0 %v498_v8  ;;  %v489_v14 = vld [vmem:[%s998_s2] ss:$0 sm:$0xff]  ;;  %s339_s8 = scalar_lea.sflag [#allocation9], %s899_s25  ;;  %s627_s11 = scalar_lea.vmem %s920_s23, 128 }
  0x5c   : > { %501 = vmatprep.subr.bf16.mxu0 %v500_v9  ;;  %p628_p4 = scmp.ne.s32.totalorder %s920_s23, %s627_s11  ;;  %s736_s12 = smov [#allocation8]  }
  0x5d   : > { %s631_s13 = sshll.u32 %s736_s12, 4  ;;  %s632_s13 = int_to_ptr.vmem [resolvable:$false] %s631_s13 }
  0x5e   : > { %p629_p6 = pnand %p628_p4, %p854_p12  ;;  %s633_s28 = scalar_lea.vmem %s632_s13, 256 }
  0x5f   : > { %503 = vmatpush1.bf16.msra.mxu0 %v502_v12  ;;  %p634_p10 = scmp.lt.s32.totalorder %s920_s23, %s632_s13  ;;  %p635_p13 = scmp.lt.s32.totalorder %s633_s28, %s627_s11 }
  0x60   : > { %p630_p8 = pneg %p629_p6 }
  0x61   : > { %p636_p3 = por %p635_p13, %p634_p10 }
  0x62   : > { %488 = vmatmul.mubr.msk.f32.vlgmr.msra.gmra.mrb[0].mxu0 %vm248_vm0, %v239_v13 }
  0x63   : > { %p637_p7 = pnand %p636_p3, %p630_p8 }
 0x135   : > { %v318_v15 = vpop.f32.mrb[0].mxu0 }
 0x136   : > { %v330_v16 = vadd.f32 %v489_v14, %v318_v15  ;;  %v320_v17 = vpop.f32.mrb[1].mxu0 }
 0x137   : > { %332 = vst [vmem:[%s238_s21] sm:$0xff] %v320_v17 }
 0x138   : > { %331 = vst [vmem:[%s231_s10] sm:$0xff] %v330_v16 }
 0x139   : > { %640 = shalt.err (!%p637_p7)
}
 0x13a   : > { %s641_s21 = scalar_lea.hbm %s925_s5, 128  ;;  %s645_s10 = scalar_lea.hbm %s1000_s4, 256 }
 0x13b   : > { %p642_p9 = scmp.ne.s32.totalorder %s925_s5, %s641_s21  ;;  %p646_p0 = scmp.lt.u32.totalorder %s925_s5, %s1000_s4 }
 0x13c   : > { %p647_p11 = scmp.lt.u32.totalorder %s645_s10, %s641_s21  ;;  %p649_p4 = scmp.lt.u32.totalorder %s641_s21, %s925_s5 }
 0x13d   : > { %p643_p2 = pnand %p642_p9, %p854_p12 }
 0x13e   : > { %p648_p1 = por %p647_p11, %p646_p0 }
 0x13f   : > { %p644_p5 = pneg %p643_p2 }
 0x140   : > { %p650_p6 = por %p649_p4, %p648_p1 }
 0x142   : > { %p651_p8 = pnand %p650_p6, %p644_p5 }
 0x144   : > { %654 = shalt.err (!%p651_p8)
}
 0x145   : > { %511 = dma.vmem_to_hbm [thread:$0]  (%p854_p12), %s920_s23, 128, %s925_s5, %s339_s8  }
 0x146   : > { %s334_s19 = scalar_lea.sflag [#allocation4], %s899_s25  ;;  %s655_s7 = scalar_lea.vmem %s932_s14, 128 }
 0x147   : > { %p656_p10 = scmp.ne.s32.totalorder %s932_s14, %s655_s7  ;;  %s737_s11 = smov [#allocation7]  }
 0x148   : > { %s659_s12 = sshll.u32 %s737_s11, 4  ;;  %s660_s12 = int_to_ptr.vmem [resolvable:$false] %s659_s12 }
 0x149   : > { %p657_p13 = pnand %p656_p10, %p854_p12  ;;  %s661_s13 = scalar_lea.vmem %s660_s12, 256 }
 0x14a   : > { %p662_p7 = scmp.lt.s32.totalorder %s932_s14, %s660_s12  ;;  %p663_p9 = scmp.lt.s32.totalorder %s661_s13, %s655_s7 }
 0x14b   : > { %p658_p3 = pneg %p657_p13 }
 0x14c   : > { %p664_p2 = por %p663_p9, %p662_p7 }
 0x14e   : > { %p665_p5 = pnand %p664_p2, %p658_p3 }
 0x150   : > { %668 = shalt.err (!%p665_p5)
}
 0x151   : > { %s669_s25 = scalar_lea.hbm %s930_s26, 128  ;;  %s673_s8 = scalar_lea.hbm %s999_s3, 256 }
 0x152   : > { %p670_p0 = scmp.ne.s32.totalorder %s930_s26, %s669_s25  ;;  %p674_p4 = scmp.lt.u32.totalorder %s930_s26, %s999_s3 }
 0x153   : > { %p675_p6 = scmp.lt.u32.totalorder %s673_s8, %s669_s25  ;;  %p677_p10 = scmp.lt.u32.totalorder %s669_s25, %s930_s26 }
 0x154   : > { %p671_p11 = pnand %p670_p0, %p854_p12 }
 0x155   : > { %p676_p8 = por %p675_p6, %p674_p4 }
 0x156   : > { %p672_p1 = pneg %p671_p11 }
 0x157   : > { %p678_p13 = por %p677_p10, %p676_p8 }
 0x159   : > { %p679_p3 = pnand %p678_p13, %p672_p1 }
 0x15b   : > { %682 = shalt.err (!%p679_p3)
}
 0x15c   : > { %510 = dma.vmem_to_hbm [thread:$0]  (%p854_p12), %s932_s14, 128, %s930_s26, %s334_s19  }
 0x15d PF: > { %s377_s9 = sand.u32 1, %s717_s15   ;;  %p1015_p7 = scmp.ne.s32.totalorder %s1005_s22, 0 }
 0x15e   : > { %p1016_p9 = scmp.ge.s32.totalorder %s729_s18, 2  ;;  %s378_s29 = scalar_lea.sflag [#allocation4], %s377_s9 }
 0x160   : > { %p523_p2 = pnand %p1016_p9, %p1015_p7 }
 0x162   : > { %708 = dma.done.wait (!%p523_p2), %s378_s29, 128  }
 0x163   : > { %710 = vsyncadd (!%p523_p2), %s378_s29, 4294967168  ;;  %s387_s10 = scalar_lea.sflag [#allocation9], %s377_s9 }
 0x164   : > { %712 = dma.done.wait (!%p523_p2), %s387_s10, 128  }
 0x165   : > { %714 = vsyncadd (!%p523_p2), %s387_s10, 4294967168  ;;  %p22_p12 = scmp.ge.s32.totalorder %s819_s27, 4   ;;  %s1017_s15 = smov %s721_s16 }
 0x166   : > { %s1018_s16 = smov %s725_s17  ;;  %s1019_s17 = smov %s850_s24 }
 0x167   : > { %s1020_s18 = smov %s819_s27  ;;  %24 = sbr.rel (!%p22_p12) target bundleno = 8 (0x8), region = 98 }
 0x16e   :  { %392 = vsyncpa [#allocation3], 1 }
 0x16f   :  { %394 = vsyncpa [#allocation3 + $0x1], 1 }
 0x170   :  { %395 = vsyncpa [#allocation6], 1 }
 0x171   :  { %396 = vsyncpa [#allocation4], 1 }
 0x172   :  { %398 = vsyncpa [#allocation4 + $0x1], 1 }
 0x173   :  { %399 = vsyncpa [#allocation9], 1 }
 0x174   :  { %401 = vsyncpa [#allocation9 + $0x1], 1 }

</bundles_post_ra>
